<compile_context>
chip_gen: v5e
topology: v5e:2x2
jax: 0.10.0
libtpu: 0.0.40
codegen_flags: <defaults>
</compile_context>

<pallas_src>
import functools

import jax
import jax.numpy as jnp
from jax.experimental import pallas as pl
from jax.experimental.pallas import tpu as pltpu

LANE = 128      # lane width / padding target for hidden & output feature dims
SUBLANE_BF16 = 16  # min sublane tile for bf16 blocks


def _round_up(n, m):
    return ((n + m - 1) // m) * m


# ---------------------------------------------------------------------------
# Pallas kernel: fused 4-layer MLP (shared layers + prefetch-selected user head)
# ---------------------------------------------------------------------------
def _user_classifier_kernel(
    u_ref,        # scalar-prefetch: [1] int32 user index (used by index_maps)
    x_ref,        # [TB, D_IN]       bf16 (unpadded input features, D_IN = 32)
    w_sl_ref,     # [D_IN, 128]      bf16
    b_sl_ref,     # [1, 128]         f32
    w_sl1_ref,    # [128, 128]       bf16
    b_sl1_ref,    # [1, 128]         f32
    w_h1_ref,     # [128, 128]       bf16 (selected user's head, squeezed)
    b_h1_ref,     # [1, 128]         f32
    w_h2_ref,     # [128, 128]       bf16
    b_h2_ref,     # [1, 128]         f32
    out_ref,      # [TB, 128]        bf16 (lane-dense padded logits)
):
    del u_ref  # consumed by the BlockSpec index maps only

    # shared layer 0: Linear + ReLU   (dropout == identity in eval mode)
    h = jnp.dot(x_ref[...], w_sl_ref[...], preferred_element_type=jnp.float32)
    h = jnp.maximum(h + b_sl_ref[...], 0.0)

    # shared layer 1: Linear + ReLU
    h = jnp.dot(h.astype(jnp.bfloat16), w_sl1_ref[...],
                preferred_element_type=jnp.float32)
    h = jnp.maximum(h + b_sl1_ref[...], 0.0)

    # user head, dense 0: Linear + ReLU
    h = jnp.dot(h.astype(jnp.bfloat16), w_h1_ref[...],
                preferred_element_type=jnp.float32)
    h = jnp.maximum(h + b_h1_ref[...], 0.0)

    # user head, dense 1 (logits) -- lane-dense [TB, 128] bf16 store
    logits = jnp.dot(h.astype(jnp.bfloat16), w_h2_ref[...],
                     preferred_element_type=jnp.float32)
    out_ref[...] = (logits + b_h2_ref[...]).astype(jnp.bfloat16)


@functools.partial(jax.jit, static_argnames=("tb",))
def user_classifier_forward(uidx, x_pad, w_sl, b_sl, w_sl1, b_sl1,
                            hw1, hb1, hw2, hb2, *, tb=128):
    """Batch-tiled bf16 forward. Returns [B_pad, 128] bf16 padded logits."""
    B_pad, DIN = x_pad.shape
    DH0 = w_sl.shape[1]
    DH1 = w_sl1.shape[1]
    DH2 = hw1.shape[2]
    DOUT = hw2.shape[2]
    nb = B_pad // tb

    grid_spec = pltpu.PrefetchScalarGridSpec(
        num_scalar_prefetch=1,
        grid=(nb,),
        in_specs=[
            # activations: one (tb, DIN) block per grid step (DIN unpadded,
            # last block dim == full array dim satisfies the layout rule)
            pl.BlockSpec((tb, DIN), lambda i, u: (i, 0)),
            # shared weights/biases: block 0 every step -> stay resident
            pl.BlockSpec((DIN, DH0), lambda i, u: (0, 0)),
            pl.BlockSpec((1, DH0), lambda i, u: (0, 0)),
            pl.BlockSpec((DH0, DH1), lambda i, u: (0, 0)),
            pl.BlockSpec((1, DH1), lambda i, u: (0, 0)),
            # stacked per-user head params: leading (user) dim squeezed,
            # block index chosen by the scalar-prefetched user index
            pl.BlockSpec((None, DH1, DH2), lambda i, u: (u[0], 0, 0)),
            pl.BlockSpec((None, 1, DH2), lambda i, u: (u[0], 0, 0)),
            pl.BlockSpec((None, DH2, DOUT), lambda i, u: (u[0], 0, 0)),
            pl.BlockSpec((None, 1, DOUT), lambda i, u: (u[0], 0, 0)),
        ],
        out_specs=pl.BlockSpec((tb, DOUT), lambda i, u: (i, 0)),
    )

    return pl.pallas_call(
        _user_classifier_kernel,
        out_shape=jax.ShapeDtypeStruct((B_pad, DOUT), jnp.bfloat16),
        grid_spec=grid_spec,
        compiler_params=pltpu.CompilerParams(
            dimension_semantics=("parallel",)),
    )(uidx, x_pad, w_sl, b_sl, w_sl1, b_sl1, hw1, hb1, hw2, hb2)


# ---------------------------------------------------------------------------
# Parameter construction (deterministic, PyTorch nn.Linear-style uniform init)
# ---------------------------------------------------------------------------
def _linear_params(key, fan_in, fan_out):
    kw, kb = jax.random.split(key)
    bound = 1.0 / jnp.sqrt(jnp.float32(fan_in))
    # stored as [in, out] so the kernel does x @ W
    w = jax.random.uniform(kw, (fan_in, fan_out), jnp.float32, -bound, bound)
    b = jax.random.uniform(kb, (1, fan_out), jnp.float32, -bound, bound)
    return w, b


def make_params(key, users, sl_in, sl_hid, sl1_in, sl1_hid,
                mt_in, mt_hid, mt_classes):
    assert sl_hid == sl1_in and sl1_hid == mt_in, "size chain must match"
    keys = jax.random.split(key, 2 + 2 * len(users))
    w_sl, b_sl = _linear_params(keys[0], sl_in, sl_hid)
    w_sl1, b_sl1 = _linear_params(keys[1], sl1_in, sl1_hid)
    heads_w1, heads_b1, heads_w2, heads_b2 = [], [], [], []
    for i, _u in enumerate(users):
        w1, b1 = _linear_params(keys[2 + 2 * i], mt_in, mt_hid)
        w2, b2 = _linear_params(keys[3 + 2 * i], mt_hid, mt_classes)
        heads_w1.append(w1); heads_b1.append(b1)
        heads_w2.append(w2); heads_b2.append(b2)
    return {
        "w_sl": w_sl, "b_sl": b_sl,
        "w_sl1": w_sl1, "b_sl1": b_sl1,
        "heads_w1": jnp.stack(heads_w1), "heads_b1": jnp.stack(heads_b1),
        "heads_w2": jnp.stack(heads_w2), "heads_b2": jnp.stack(heads_b2),
    }


def pack_for_kernel(params):
    """Pad hidden/output feature dims to 128; weights -> bf16.

    The *input* feature dim of the first layer is deliberately left unpadded
    (per perf review: x is a per-step HBM stream, weights are resident).
    """
    def pad_w(w, pad_in=True):
        i, o = w.shape
        ip = _round_up(i, LANE) if pad_in else i
        out = jnp.zeros((ip, _round_up(o, LANE)), jnp.bfloat16)
        return out.at[:i, :o].set(w.astype(jnp.bfloat16))

    def pad_b(b):
        o = b.shape[-1]
        out = jnp.zeros((1, _round_up(o, LANE)), jnp.float32)
        return out.at[:, :o].set(b)

    def pad_w_stack(w):
        u, i, o = w.shape
        out = jnp.zeros((u, _round_up(i, LANE), _round_up(o, LANE)), jnp.bfloat16)
        return out.at[:, :i, :o].set(w.astype(jnp.bfloat16))

    def pad_b_stack(b):
        u, _, o = b.shape
        out = jnp.zeros((u, 1, _round_up(o, LANE)), jnp.float32)
        return out.at[:, :, :o].set(b)

    return {
        "w_sl": pad_w(params["w_sl"], pad_in=False),  # (32, 128)
        "b_sl": pad_b(params["b_sl"]),
        "w_sl1": pad_w(params["w_sl1"]), "b_sl1": pad_b(params["b_sl1"]),
        "heads_w1": pad_w_stack(params["heads_w1"]),
        "heads_b1": pad_b_stack(params["heads_b1"]),
        "heads_w2": pad_w_stack(params["heads_w2"]),
        "heads_b2": pad_b_stack(params["heads_b2"]),
        "n_classes": params["heads_w2"].shape[-1],
        "n_in": params["w_sl"].shape[0],
    }


def _choose_tb(B, max_tb=512):
    """Batch tile: pad tiny batches only to the bf16 sublane tile (16 rows);
    for larger batches aim for >=2 grid steps (v7x megacore) capped at max_tb
    rows to amortize the ~0.35us/step grid overhead."""
    if B <= 2 * SUBLANE_BF16:
        return _round_up(B, SUBLANE_BF16)
    return min(max_tb, _round_up((B + 1) // 2, SUBLANE_BF16))


def run_user_classifier(kparams, users, user, x, *, tb=None):
    """Glue: pad the batch, launch the kernel, slice logits back to f32."""
    uidx = jnp.asarray([users.index(user)], dtype=jnp.int32)
    B, din = x.shape
    if tb is None:
        tb = _choose_tb(B)
    B_pad = _round_up(B, tb)
    x_pad = jnp.zeros((B_pad, din), jnp.bfloat16)
    x_pad = x_pad.at[:B, :].set(x.astype(jnp.bfloat16))
    out = user_classifier_forward(
        uidx, x_pad,
        kparams["w_sl"], kparams["b_sl"],
        kparams["w_sl1"], kparams["b_sl1"],
        kparams["heads_w1"], kparams["heads_b1"],
        kparams["heads_w2"], kparams["heads_b2"],
        tb=tb)
    return out[:B, :kparams["n_classes"]].astype(jnp.float32)


# ---------------------------------------------------------------------------
# Pure-JAX references
# ---------------------------------------------------------------------------
def _ref_forward_f32(params, users, user, x):
    uidx = users.index(user)
    h = jnp.maximum(x @ params["w_sl"] + params["b_sl"], 0.0)
    h = jnp.maximum(h @ params["w_sl1"] + params["b_sl1"], 0.0)
    h = jnp.maximum(h @ params["heads_w1"][uidx] + params["heads_b1"][uidx], 0.0)
    return h @ params["heads_w2"][uidx] + params["heads_b2"][uidx]


def _ref_forward_bf16(params, users, user, x):
    """Same bf16-operand / f32-accumulate pattern as the kernel."""
    uidx = users.index(user)

    def lin(h, w, b):
        return jnp.dot(h.astype(jnp.bfloat16), w.astype(jnp.bfloat16),
                       preferred_element_type=jnp.float32) + b

    h = jnp.maximum(lin(x, params["w_sl"], params["b_sl"]), 0.0)
    h = jnp.maximum(lin(h, params["w_sl1"], params["b_sl1"]), 0.0)
    h = jnp.maximum(lin(h, params["heads_w1"][uidx], params["heads_b1"][uidx]), 0.0)
    return lin(h, params["heads_w2"][uidx], params["heads_b2"][uidx])


if __name__ == "__main__":
    users = ["user_0", "user_1", "user_2"]
    B = 8
    sl_input_size, sl_hidden_size = 32, 64
    sl_1_input_size, sl_1_hidden_size = 64, 48
    multitask_input_size, multitask_hidden_size = 48, 32
    multitask_num_classes = 5

    key = jax.random.PRNGKey(0)
    k_params, k_x = jax.random.split(key)

    params = make_params(
        k_params, users,
        sl_input_size, sl_hidden_size,
        sl_1_input_size, sl_1_hidden_size,
        multitask_input_size, multitask_hidden_size, multitask_num_classes,
    )
    kparams = pack_for_kernel(params)
    x = jax.random.normal(k_x, (B, sl_input_size), jnp.float32)

    out = run_user_classifier(kparams, users, "user_1", x)
    out = jax.block_until_ready(out)
    assert out.shape == (B, multitask_num_classes)

    # tight-ish check: same bf16-operand / f32-accumulate math path
    # (kernel output additionally rounds logits to bf16, hence 2e-2 tolerance)
    ref_q = _ref_forward_bf16(params, users, "user_1", x)
    assert jnp.allclose(out, ref_q, atol=2e-2, rtol=2e-2), (
        "mismatch vs bf16-path reference")

    # loose check: original f32 module semantics (bf16 quantization only)
    ref_f32 = _ref_forward_f32(params, users, "user_1", x)
    assert jnp.allclose(out, ref_f32, atol=1e-1, rtol=1e-1), (
        "mismatch vs f32 reference")

    print("KERNEL_OK")
</pallas_src>

<mosaic_0001>
module attributes {stable_mosaic.version = 11 : i64} {
  func.func @_user_classifier_kernel(%arg0: i32, %arg1: memref<1xi32, #tpu.memory_space<smem>>, %arg2: memref<16x32xbf16, #tpu.memory_space<vmem>>, %arg3: memref<32x128xbf16, #tpu.memory_space<vmem>>, %arg4: memref<1x128xf32, #tpu.memory_space<vmem>>, %arg5: memref<128x128xbf16, #tpu.memory_space<vmem>>, %arg6: memref<1x128xf32, #tpu.memory_space<vmem>>, %arg7: memref<1x128x128xbf16, #tpu.memory_space<vmem>>, %arg8: memref<1x1x128xf32, #tpu.memory_space<vmem>>, %arg9: memref<1x128x128xbf16, #tpu.memory_space<vmem>>, %arg10: memref<1x1x128xf32, #tpu.memory_space<vmem>>, %arg11: memref<16x128xbf16, #tpu.memory_space<vmem>>) attributes {dimension_semantics = [#tpu.dimension_semantics<parallel>], iteration_bounds = array<i64: 1>, scalar_prefetch = 1 : i64, scratch_operands = 0 : i64, tpu.core_type = #tpu.core_type<tc>, window_params = [{transform_indices = @transform_0, window_bounds = array<i64: 16, 32>}, {pipeline_mode = #tpu.pipeline_mode<synchronous>, transform_indices = @transform_1, window_bounds = array<i64: 32, 128>}, {pipeline_mode = #tpu.pipeline_mode<synchronous>, transform_indices = @transform_2, window_bounds = array<i64: 1, 128>}, {pipeline_mode = #tpu.pipeline_mode<synchronous>, transform_indices = @transform_3, window_bounds = array<i64: 128, 128>}, {pipeline_mode = #tpu.pipeline_mode<synchronous>, transform_indices = @transform_4, window_bounds = array<i64: 1, 128>}, {transform_indices = @transform_5, window_bounds = array<i64: 1, 128, 128>}, {transform_indices = @transform_6, window_bounds = array<i64: 1, 1, 128>}, {transform_indices = @transform_7, window_bounds = array<i64: 1, 128, 128>}, {transform_indices = @transform_8, window_bounds = array<i64: 1, 1, 128>}, {transform_indices = @transform_9, window_bounds = array<i64: 16, 128>}]} {
    %c0 = arith.constant 0 : index
    %c0_0 = arith.constant 0 : index
    %0 = vector.load %arg2[%c0, %c0_0] : memref<16x32xbf16, #tpu.memory_space<vmem>>, vector<16x32xbf16>
    %c0_1 = arith.constant 0 : index
    %c0_2 = arith.constant 0 : index
    %1 = vector.load %arg3[%c0_1, %c0_2] : memref<32x128xbf16, #tpu.memory_space<vmem>>, vector<32x128xbf16>
    %cst = arith.constant dense<0.000000e+00> : vector<16x128xf32>
    %2 = tpu.matmul %0, %1, %cst {dimension_numbers = #tpu.dot_dimension_numbers<[1], [0], [0], [1], [0, 0, 1, 1], [], []>} : vector<16x32xbf16>, vector<32x128xbf16>, vector<16x128xf32> -> vector<16x128xf32>
    %c0_3 = arith.constant 0 : index
    %c0_4 = arith.constant 0 : index
    %3 = vector.load %arg4[%c0_3, %c0_4] : memref<1x128xf32, #tpu.memory_space<vmem>>, vector<1x128xf32>
    %4 = vector.broadcast %3 : vector<1x128xf32> to vector<16x128xf32>
    %5 = arith.addf %2, %4 : vector<16x128xf32>
    %cst_5 = arith.constant 0.000000e+00 : f32
    %6 = vector.broadcast %cst_5 : f32 to vector<16x128xf32>
    %7 = arith.maximumf %5, %6 : vector<16x128xf32>
    %8 = arith.truncf %7 : vector<16x128xf32> to vector<16x128xbf16>
    %c0_6 = arith.constant 0 : index
    %c0_7 = arith.constant 0 : index
    %9 = vector.load %arg5[%c0_6, %c0_7] : memref<128x128xbf16, #tpu.memory_space<vmem>>, vector<128x128xbf16>
    %cst_8 = arith.constant dense<0.000000e+00> : vector<16x128xf32>
    %10 = tpu.matmul %8, %9, %cst_8 {dimension_numbers = #tpu.dot_dimension_numbers<[1], [0], [0], [1], [0, 0, 1, 1], [], []>} : vector<16x128xbf16>, vector<128x128xbf16>, vector<16x128xf32> -> vector<16x128xf32>
    %c0_9 = arith.constant 0 : index
    %c0_10 = arith.constant 0 : index
    %11 = vector.load %arg6[%c0_9, %c0_10] : memref<1x128xf32, #tpu.memory_space<vmem>>, vector<1x128xf32>
    %12 = vector.broadcast %11 : vector<1x128xf32> to vector<16x128xf32>
    %13 = arith.addf %10, %12 : vector<16x128xf32>
    %cst_11 = arith.constant 0.000000e+00 : f32
    %14 = vector.broadcast %cst_11 : f32 to vector<16x128xf32>
    %15 = arith.maximumf %13, %14 : vector<16x128xf32>
    %16 = arith.truncf %15 : vector<16x128xf32> to vector<16x128xbf16>
    %c0_12 = arith.constant 0 : index
    %c0_13 = arith.constant 0 : index
    %c0_14 = arith.constant 0 : index
    %17 = vector.load %arg7[%c0_12, %c0_13, %c0_14] : memref<1x128x128xbf16, #tpu.memory_space<vmem>>, vector<1x128x128xbf16>
    %18 = vector.shape_cast %17 : vector<1x128x128xbf16> to vector<128x128xbf16>
    %cst_15 = arith.constant dense<0.000000e+00> : vector<16x128xf32>
    %19 = tpu.matmul %16, %18, %cst_15 {dimension_numbers = #tpu.dot_dimension_numbers<[1], [0], [0], [1], [0, 0, 1, 1], [], []>} : vector<16x128xbf16>, vector<128x128xbf16>, vector<16x128xf32> -> vector<16x128xf32>
    %c0_16 = arith.constant 0 : index
    %c0_17 = arith.constant 0 : index
    %c0_18 = arith.constant 0 : index
    %20 = vector.load %arg8[%c0_16, %c0_17, %c0_18] : memref<1x1x128xf32, #tpu.memory_space<vmem>>, vector<1x1x128xf32>
    %21 = vector.shape_cast %20 : vector<1x1x128xf32> to vector<1x128xf32>
    %22 = vector.broadcast %21 : vector<1x128xf32> to vector<16x128xf32>
    %23 = arith.addf %19, %22 : vector<16x128xf32>
    %cst_19 = arith.constant 0.000000e+00 : f32
    %24 = vector.broadcast %cst_19 : f32 to vector<16x128xf32>
    %25 = arith.maximumf %23, %24 : vector<16x128xf32>
    %26 = arith.truncf %25 : vector<16x128xf32> to vector<16x128xbf16>
    %c0_20 = arith.constant 0 : index
    %c0_21 = arith.constant 0 : index
    %c0_22 = arith.constant 0 : index
    %27 = vector.load %arg9[%c0_20, %c0_21, %c0_22] : memref<1x128x128xbf16, #tpu.memory_space<vmem>>, vector<1x128x128xbf16>
    %28 = vector.shape_cast %27 : vector<1x128x128xbf16> to vector<128x128xbf16>
    %cst_23 = arith.constant dense<0.000000e+00> : vector<16x128xf32>
    %29 = tpu.matmul %26, %28, %cst_23 {dimension_numbers = #tpu.dot_dimension_numbers<[1], [0], [0], [1], [0, 0, 1, 1], [], []>} : vector<16x128xbf16>, vector<128x128xbf16>, vector<16x128xf32> -> vector<16x128xf32>
    %c0_24 = arith.constant 0 : index
    %c0_25 = arith.constant 0 : index
    %c0_26 = arith.constant 0 : index
    %30 = vector.load %arg10[%c0_24, %c0_25, %c0_26] : memref<1x1x128xf32, #tpu.memory_space<vmem>>, vector<1x1x128xf32>
    %31 = vector.shape_cast %30 : vector<1x1x128xf32> to vector<1x128xf32>
    %32 = vector.broadcast %31 : vector<1x128xf32> to vector<16x128xf32>
    %33 = arith.addf %29, %32 : vector<16x128xf32>
    %34 = arith.truncf %33 : vector<16x128xf32> to vector<16x128xbf16>
    %c0_27 = arith.constant 0 : index
    %c0_28 = arith.constant 0 : index
    %35 = vector.load %arg11[%c0_27, %c0_28] : memref<16x128xbf16, #tpu.memory_space<vmem>>, vector<16x128xbf16>
    tpu.vector_store %arg11[%c0_27, %c0_28], %34 {strides = array<i32>} : memref<16x128xbf16, #tpu.memory_space<vmem>>, vector<16x128xbf16>,
    return
  }
  func.func @transform_0(%arg0: i32, %arg1: memref<1xi32, #tpu.memory_space<smem>>) -> (i32, i32) {
    %c0_i32 = arith.constant 0 : i32
    %c0_i32_0 = arith.constant 0 : i32
    return %arg0, %c0_i32 : i32, i32
  }
  func.func @transform_1(%arg0: i32, %arg1: memref<1xi32, #tpu.memory_space<smem>>) -> (i32, i32) {
    %c0_i32 = arith.constant 0 : i32
    %c0_i32_0 = arith.constant 0 : i32
    %c0_i32_1 = arith.constant 0 : i32
    return %c0_i32, %c0_i32_0 : i32, i32
  }
  func.func @transform_2(%arg0: i32, %arg1: memref<1xi32, #tpu.memory_space<smem>>) -> (i32, i32) {
    %c0_i32 = arith.constant 0 : i32
    %c0_i32_0 = arith.constant 0 : i32
    %c0_i32_1 = arith.constant 0 : i32
    return %c0_i32, %c0_i32_0 : i32, i32
  }
  func.func @transform_3(%arg0: i32, %arg1: memref<1xi32, #tpu.memory_space<smem>>) -> (i32, i32) {
    %c0_i32 = arith.constant 0 : i32
    %c0_i32_0 = arith.constant 0 : i32
    %c0_i32_1 = arith.constant 0 : i32
    return %c0_i32, %c0_i32_0 : i32, i32
  }
  func.func @transform_4(%arg0: i32, %arg1: memref<1xi32, #tpu.memory_space<smem>>) -> (i32, i32) {
    %c0_i32 = arith.constant 0 : i32
    %c0_i32_0 = arith.constant 0 : i32
    %c0_i32_1 = arith.constant 0 : i32
    return %c0_i32, %c0_i32_0 : i32, i32
  }
  func.func @transform_5(%arg0: i32, %arg1: memref<1xi32, #tpu.memory_space<smem>>) -> (i32, i32, i32) {
    %c0 = arith.constant 0 : index
    %0 = memref.load %arg1[%c0] : memref<1xi32, #tpu.memory_space<smem>>
    %c0_i32 = arith.constant 0 : i32
    %c0_i32_0 = arith.constant 0 : i32
    %c0_i32_1 = arith.constant 0 : i32
    return %0, %c0_i32, %c0_i32_0 : i32, i32, i32
  }
  func.func @transform_6(%arg0: i32, %arg1: memref<1xi32, #tpu.memory_space<smem>>) -> (i32, i32, i32) {
    %c0 = arith.constant 0 : index
    %0 = memref.load %arg1[%c0] : memref<1xi32, #tpu.memory_space<smem>>
    %c0_i32 = arith.constant 0 : i32
    %c0_i32_0 = arith.constant 0 : i32
    %c0_i32_1 = arith.constant 0 : i32
    return %0, %c0_i32, %c0_i32_0 : i32, i32, i32
  }
  func.func @transform_7(%arg0: i32, %arg1: memref<1xi32, #tpu.memory_space<smem>>) -> (i32, i32, i32) {
    %c0 = arith.constant 0 : index
    %0 = memref.load %arg1[%c0] : memref<1xi32, #tpu.memory_space<smem>>
    %c0_i32 = arith.constant 0 : i32
    %c0_i32_0 = arith.constant 0 : i32
    %c0_i32_1 = arith.constant 0 : i32
    return %0, %c0_i32, %c0_i32_0 : i32, i32, i32
  }
  func.func @transform_8(%arg0: i32, %arg1: memref<1xi32, #tpu.memory_space<smem>>) -> (i32, i32, i32) {
    %c0 = arith.constant 0 : index
    %0 = memref.load %arg1[%c0] : memref<1xi32, #tpu.memory_space<smem>>
    %c0_i32 = arith.constant 0 : i32
    %c0_i32_0 = arith.constant 0 : i32
    %c0_i32_1 = arith.constant 0 : i32
    return %0, %c0_i32, %c0_i32_0 : i32, i32, i32
  }
  func.func @transform_9(%arg0: i32, %arg1: memref<1xi32, #tpu.memory_space<smem>>) -> (i32, i32) {
    %c0_i32 = arith.constant 0 : i32
    %c0_i32_0 = arith.constant 0 : i32
    return %arg0, %c0_i32 : i32, i32
  }
}

</mosaic_0001>

<bundles_post_ra>
// kernel: user_classifier_forward.1
= control target key start
LH: loop header
LB: loop body
LE: loop exit
PB: predicated region body
PF: predicated region fallthrough
CT: control target
= control target key end

     0   :  { %16 = vsyncpa [#allocation5], 0  ;;  %s1024_s0 = inlined_call_operand.<no memory space> [shape: s32[1], index: 0, kind: input, shape index: {}]   ;;  %s1025_s1 = inlined_call_operand.hbm [shape: bf16[16,32], index: 1, kind: input, shape index: {}]   ;;  %s1026_s2 = inlined_call_operand.hbm [shape: bf16[32,128], index: 2, kind: input, shape index: {}]   ;;  %s1027_s3 = inlined_call_operand.hbm [shape: f32[1,128], index: 3, kind: input, shape index: {}]   ;;  %s1028_s4 = inlined_call_operand.hbm [shape: bf16[128,128], index: 4, kind: input, shape index: {}]   ;;  %s1029_s5 = inlined_call_operand.hbm [shape: f32[1,128], index: 5, kind: input, shape index: {}]   ;;  %s1030_s6 = inlined_call_operand.hbm [shape: bf16[3,128,128], index: 6, kind: input, shape index: {}]   ;;  %s1031_s7 = inlined_call_operand.vmem [shape: f32[3,1,128], index: 7, kind: input, shape index: {}]   ;;  %s1032_s8 = inlined_call_operand.hbm [shape: bf16[3,128,128], index: 8, kind: input, shape index: {}]   ;;  %s1033_s9 = inlined_call_operand.vmem [shape: f32[3,1,128], index: 9, kind: input, shape index: {}]   ;;  %s1034_s10 = inlined_call_operand.hbm [shape: bf16[16,128], index: 10, kind: output, shape index: {}]  }
   0x1   :  { %17 = vsyncpa [#allocation8], 0 }
   0x2   :  { %18 = vsyncpa [#allocation11], 0 }
   0x3   :  { %19 = vsyncpa [#allocation14], 0 }
   0x4   :  { %20 = vsyncpa [#allocation6], 0  ;;  %s38_s15 = sshll.u32 %s1026_s2, 4  ;;  %s878_s16 = smov [#allocation7]   ;;  %s39_s15 = int_to_ptr.hbm [resolvable:$true] %s38_s15 }
   0x5   :  { %s40_s17 = sshll.u32 %s878_s16, 4  ;;  %s62_s20 = sshll.u32 %s1028_s4, 4  ;;  %s41_s17 = int_to_ptr.vmem [resolvable:$true] %s40_s17  ;;  %s63_s20 = int_to_ptr.hbm [resolvable:$true] %s62_s20 }
   0x6   :  { %s879_s21 = smov 64   ;;  %s880_s22 = smov 4  }
   0x7   :  { %46 = dma.hbm_to_vmem [thread:$0]  %s39_s15, 256, %s41_s17, [#allocation8], %s879_s21, %s879_s21, %s880_s22  }
   0x8   :  { %s881_s23 = smov [#allocation10]   ;;  %s628_s2 = sshll.u32 %s1024_s0, 6 }
   0x9   :  { %s64_s24 = sshll.u32 %s881_s23, 4  ;;  %s89_s29 = scalar_lea.hbm %s1030_s6, %s628_s2  ;;  %s65_s24 = int_to_ptr.vmem [resolvable:$true] %s64_s24 }
   0xa   :  { %70 = dma.hbm_to_vmem [thread:$0]  %s63_s20, 1024, %s65_s24, [#allocation11], %s879_s21, %s879_s21, %s880_s22  }
   0xb   :  { %s90_s4 = sshll.u32 %s89_s29, 4  ;;  %s882_s30 = smov [#allocation13]   ;;  %s91_s4 = int_to_ptr.hbm [resolvable:$true] %s90_s4 }
   0xc   :  { %s92_s11 = sshll.u32 %s882_s30, 4  ;;  %s964_s14 = scalar_lea.hbm %s1032_s8, %s628_s2  ;;  %s93_s11 = int_to_ptr.vmem [resolvable:$true] %s92_s11 }
   0xd   :  { %s724_s15 = sshra.s32 %s91_s4, 4  ;;  %s728_s19 = scalar_lea.hbm %s1030_s6, 192  ;;  %s725_s15 = int_to_ptr.hbm [resolvable:$true] %s724_s15 }
   0xe   :  { %s726_s16 = scalar_lea.hbm %s725_s15, 64  ;;  %p729_p1 = scmp.lt.s32.totalorder %s725_s15, %s1030_s6 }
   0xf   :  { %p727_p0 = scmp.ne.s32.totalorder %s725_s15, %s726_s16  ;;  %p730_p2 = scmp.lt.s32.totalorder %s728_s19, %s726_s16 }
  0x11   :  { %p731_p3 = por %p730_p2, %p729_p1 }
  0x13   :  { %p732_p4 = pnand %p731_p3, %p727_p0 }
  0x15   :  { %735 = shalt.err (!%p732_p4)
}
  0x16   :  { %98 = dma.hbm_to_vmem [thread:$0]  %s91_s4, 1024, %s93_s11, [#allocation14], %s879_s21, %s879_s21, %s880_s22  }
  0x17   :  { %s25_s26 = sshll.u32 %s1025_s1, 4  ;;  %s883_s2 = smov [#allocation4]   ;;  %s26_s26 = int_to_ptr.hbm [resolvable:$true] %s25_s26 }
  0x18   :  { %s27_s27 = sshll.u32 %s883_s2, 4  ;;  %s52_s6 = sshll.u32 %s1027_s3, 4  ;;  %s28_s27 = int_to_ptr.vmem [resolvable:$true] %s27_s27  ;;  %s53_s6 = int_to_ptr.hbm [resolvable:$true] %s52_s6 }
  0x19   :  { %33 = dma.hbm_to_vmem [thread:$0]  %s26_s26, 128, %s28_s27, [#allocation5], %s879_s21, %s879_s21, %s880_s22  }
  0x1a   :  { %s884_s30 = smov [#allocation9]   ;;  %s76_s13 = sshll.u32 %s1029_s5, 4  ;;  %s77_s13 = int_to_ptr.hbm [resolvable:$true] %s76_s13 }
  0x1b   :  { %s54_s12 = sshll.u32 %s884_s30, 4  ;;  %s114_s1 = sshll.u32 %s964_s14, 4  ;;  %s55_s12 = int_to_ptr.vmem [resolvable:$true] %s54_s12  ;;  %s115_s1 = int_to_ptr.hbm [resolvable:$true] %s114_s1 }
  0x1c   :  { %57 = dma.hbm_to_vmem [thread:$0]  %s53_s6, 16, %s55_s12, [#allocation8]  }
  0x1d   :  { %s885_s15 = smov [#allocation12]   ;;  %s886_s3 = smov [#allocation15]  }
  0x1e   :  { %s78_s16 = sshll.u32 %s885_s15, 4  ;;  %s116_s17 = sshll.u32 %s886_s3, 4  ;;  %s79_s16 = int_to_ptr.vmem [resolvable:$true] %s78_s16  ;;  %s117_s17 = int_to_ptr.vmem [resolvable:$true] %s116_s17 }
  0x1f   :  { %81 = dma.hbm_to_vmem [thread:$0]  %s77_s13, 16, %s79_s16, [#allocation11]  }
  0x20   :  { %s820_s18 = sshra.s32 %s115_s1, 4  ;;  %s824_s5 = scalar_lea.hbm %s1032_s8, 192  ;;  %s821_s18 = int_to_ptr.hbm [resolvable:$true] %s820_s18 }
  0x21   :  { %s822_s19 = scalar_lea.hbm %s821_s18, 64  ;;  %p825_p6 = scmp.lt.s32.totalorder %s821_s18, %s1032_s8 }
  0x22   :  { %p823_p5 = scmp.ne.s32.totalorder %s821_s18, %s822_s19  ;;  %p826_p7 = scmp.lt.s32.totalorder %s824_s5, %s822_s19 }
  0x24   :  { %p827_p8 = por %p826_p7, %p825_p6 }
  0x26   :  { %p828_p9 = pnand %p827_p8, %p823_p5 }
  0x28   :  { %831 = shalt.err (!%p828_p9)
}
  0x29   :  { %122 = dma.hbm_to_vmem [thread:$0]  %s115_s1, 1024, %s117_s17, [#allocation14], %s879_s21, %s879_s21, %s880_s22  }
  0x2a   :  { %868 = dma.done.wait [#allocation5], 128  }
  0x2b   :  { %869 = vsyncadd [#allocation5], 4294967168 }
  0x2c   :  { %870 = dma.done.wait [#allocation8], 272  }
  0x2d   :  { %871 = vsyncadd [#allocation8], 4294967024 }
  0x2e   :  { %872 = dma.done.wait [#allocation11], 1040  }
  0x2f   :  { %873 = vsyncadd [#allocation11], 4294966256 }
  0x30   :  { %874 = dma.done.wait [#allocation14], 2048  }
  0x31   :  { %875 = vsyncadd [#allocation14], 4294965248  ;;  %v632_v0 = vld [vmem:[#allocation7 + $0x8] sm:$0xff]  ;;  %v631_v2 = vld [vmem:[#allocation7] sm:$0xff]  ;;  %vm206_vm0 = vcmask 261120   ;;  %p168_p10 = scmp.lt.s32.totalorder %s1024_s0, 2 }
  0x32   :  { %v640_v1 = vld [vmem:[#allocation10 + $0x38] sm:$0xff]  ;;  %216 = vmatpush.bf16.msra.mxu0 %v632_v0  ;;  %v639_v3 = vld [vmem:[#allocation10 + $0x30] sm:$0xff]  ;;  %v630_v4 = vld [vmem:[#allocation4] sm:$0xff]  ;;  %s489_s16 = sshll.u32 %s1034_s10, 4  ;;  %s490_s16 = int_to_ptr.hbm [resolvable:$true] %s489_s16 }
  0x33   :  { %295 = vmatpush.bf16.msra.mxu1 %v640_v1  ;;  %v638_v5 = vld [vmem:[#allocation10 + $0x28] sm:$0xff]  ;;  %v637_v6 = vld [vmem:[#allocation10 + $0x20] sm:$0xff]  ;;  %v636_v7 = vld [vmem:[#allocation10 + $0x18] sm:$0xff]  ;;  %s1036_s0 = smov (!%p168_p10, %s1024_s0), 2 }
  0x34   :  { %v635_v8 = vld [vmem:[#allocation10 + $0x10] sm:$0xff]  ;;  %v634_v9 = vld [vmem:[#allocation10 + $0x8] sm:$0xff]  ;;  %v633_v10 = vld [vmem:[#allocation10] sm:$0xff]  ;;  %s170_s29 = scalar_lea.vmem %s1031_s7, %s1036_s0  ;;  %s176_s12 = scalar_lea.vmem %s1033_s9, %s1036_s0 }
  0x35   :  { %v648_v11 = vld [vmem:[#allocation13 + $0x38] sm:$0xff]  ;;  %v647_v12 = vld [vmem:[#allocation13 + $0x30] sm:$0xff]  ;;  %v646_v13 = vld [vmem:[#allocation13 + $0x28] sm:$0xff]  ;;  %s887_s9 = smov [#allocation16]  }
  0x36   :  { %217 = vmatpush.bf16.msra.mxu0 %v631_v2  ;;  %380 = vmatpush.bf16.msra.mxu2 %v648_v11  ;;  %v645_v14 = vld [vmem:[#allocation13 + $0x20] sm:$0xff]  ;;  %v672_v16 = vld [vmem:[#allocation9] ss:$0 sm:$0xff]  ;;  %v643_v24 = vld [vmem:[#allocation13 + $0x10] sm:$0xff]  ;;  %s487_s13 = sshll.u32 %s887_s9, 4  ;;  %s488_s13 = int_to_ptr.vmem [resolvable:$true] %s487_s13 }
  0x37   :  { %296 = vmatpush.bf16.msra.mxu1 %v639_v3  ;;  %v644_v23 = vld [vmem:[#allocation13 + $0x18] sm:$0xff]  ;;  %v642_v25 = vld [vmem:[#allocation13 + $0x8] sm:$0xff]  ;;  %v641_v26 = vld [vmem:[#allocation13] sm:$0xff] }
  0x38   :  { %v656_v27 = vld [vmem:[#allocation15 + $0x38] sm:$0xff]  ;;  %v655_v28 = vld [vmem:[#allocation15 + $0x30] sm:$0xff]  ;;  %v654_v29 = vld [vmem:[#allocation15 + $0x28] sm:$0xff] }
  0x39   :  { %531 = vmatmul.msk.bf16.vlgmr.msra.gmra.mxu0 %vm206_vm0, %v630_v4  ;;  %465 = vmatpush.bf16.msra.mxu3 %v656_v27  ;;  %v653_v30 = vld [vmem:[#allocation15 + $0x20] sm:$0xff]  ;;  %v673_v32 = vld [vmem:[#allocation12] ss:$0 sm:$0xff]  ;;  %v651_v40 = vld [vmem:[#allocation15 + $0x10] sm:$0xff] }
  0x3a   :  { %381 = vmatpush.bf16.msra.mxu2 %v647_v12  ;;  %v652_v39 = vld [vmem:[#allocation15 + $0x18] sm:$0xff]  ;;  %v650_v41 = vld [vmem:[#allocation15 + $0x8] sm:$0xff]  ;;  %v649_v42 = vld [vmem:[#allocation15] sm:$0xff] }
  0x3b   :  { %297 = vmatpush.bf16.msra.mxu1 %v638_v5  ;;  %v674_v44 = vld [vmem:[%s170_s29] ss:$0 sm:$0xff] }
  0x3c   :  { %v675_v52 = vld [vmem:[%s176_s12] ss:$0 sm:$0xff] }
  0x3d   :  { %466 = vmatpush.bf16.msra.mxu3 %v655_v28 }
  0x3e   :  { %382 = vmatpush.bf16.msra.mxu2 %v646_v13 }
  0x3f   :  { %298 = vmatpush.bf16.msra.mxu1 %v637_v6 }
  0x41   :  { %467 = vmatpush.bf16.msra.mxu3 %v654_v29 }
  0x42   :  { %383 = vmatpush.bf16.msra.mxu2 %v645_v14 }
  0x43   :  { %299 = vmatpush.bf16.msra.mxu1 %v636_v7 }
  0x45   :  { %468 = vmatpush.bf16.msra.mxu3 %v653_v30 }
  0x46   :  { %384 = vmatpush.bf16.msra.mxu2 %v644_v23 }
  0x47   :  { %300 = vmatpush.bf16.msra.mxu1 %v635_v8 }
  0x49   :  { %469 = vmatpush.bf16.msra.mxu3 %v652_v39 }
  0x4a   :  { %385 = vmatpush.bf16.msra.mxu2 %v643_v24 }
  0x4b   :  { %301 = vmatpush.bf16.msra.mxu1 %v634_v9 }
  0x4d   :  { %470 = vmatpush.bf16.msra.mxu3 %v651_v40 }
  0x4e   :  { %386 = vmatpush.bf16.msra.mxu2 %v642_v25 }
  0x4f   :  { %302 = vmatpush.bf16.msra.mxu1 %v633_v10 }
  0x51   :  { %471 = vmatpush.bf16.msra.mxu3 %v650_v41 }
  0x52   :  { %387 = vmatpush.bf16.msra.mxu2 %v641_v26 }
  0x55   :  { %472 = vmatpush.bf16.msra.mxu3 %v649_v42 }
  0xb6   :  { %v219_v15 = vpop.f32.mrf.mxu0 }
  0xb7   :  { %v220_v17 = vadd.f32 %v672_v16, %v219_v15 }
  0xb9   :  { %v224_v20 = vmax.f32 %v220_v17, 0.0 }
  0xbe   :  { %v221_v18 = vpop.f32.mrf.mxu0 }
  0xbf   :  { %v222_v19 = vadd.f32 %v672_v16, %v221_v18 }
  0xc1   :  { %v225_v21 = vmax.f32 %v222_v19, 0.0 }
  0xc3   :  { %v226_v22 = vpack.c.bf16 %v225_v21, %v224_v20 }
  0xc5   :  { %303 = vmatmul.bf16.vlgmr.msra.gmra.mxu1 %v226_v22 }
 0x142   :  { %v304_v31 = vpop.f32.mrf.mxu1 }
 0x143   :  { %v305_v33 = vadd.f32 %v673_v32, %v304_v31 }
 0x145   :  { %v309_v36 = vmax.f32 %v305_v33, 0.0 }
 0x14a   :  { %v306_v34 = vpop.f32.mrf.mxu1 }
 0x14b   :  { %v307_v35 = vadd.f32 %v673_v32, %v306_v34 }
 0x14d   :  { %v310_v37 = vmax.f32 %v307_v35, 0.0 }
 0x14f   :  { %v311_v38 = vpack.c.bf16 %v310_v37, %v309_v36 }
 0x151   :  { %388 = vmatmul.bf16.vlgmr.msra.gmra.mxu2 %v311_v38 }
 0x1d4   :  { %v389_v43 = vpop.f32.mrf.mxu2 }
 0x1d5   :  { %v390_v45 = vadd.f32 %v674_v44, %v389_v43 }
 0x1d7   :  { %v394_v48 = vmax.f32 %v390_v45, 0.0 }
 0x1dc   :  { %v391_v46 = vpop.f32.mrf.mxu2 }
 0x1dd   :  { %v392_v47 = vadd.f32 %v674_v44, %v391_v46 }
 0x1df   :  { %v395_v49 = vmax.f32 %v392_v47, 0.0 }
 0x1e1   :  { %v396_v50 = vpack.c.bf16 %v395_v49, %v394_v48 }
 0x1e3   :  { %473 = vmatmul.bf16.vlgmr.msra.gmra.mxu3 %v396_v50 }
 0x266   :  { %v474_v51 = vpop.f32.mrf.mxu3 }
 0x267   :  { %v475_v54 = vadd.f32 %v675_v52, %v474_v51 }
 0x26e   :  { %v476_v53 = vpop.f32.mrf.mxu3 }
 0x26f   :  { %v477_v55 = vadd.f32 %v675_v52, %v476_v53 }
 0x271   :  { %v660_v56 = vpack.c.bf16 %v477_v55, %v475_v54 }
 0x273   :  { %661 = vst [vmem:[#allocation16] sm:$0xff] %v660_v56  }
 0x274   :  { %495 = dma.vmem_to_hbm [thread:$0]  %s488_s13, 128, %s490_s16, [#allocation6], %s879_s21, %s879_s21, %s880_s22  }
 0x275   :  { %876 = dma.done.wait [#allocation6], 128  }
 0x276   :  { %877 = vsyncadd [#allocation6], 4294967168 }
 0x277   :  { %500 = vsyncpa [#allocation5], 1 }
 0x278   :  { %501 = vsyncpa [#allocation8], 1 }
 0x279   :  { %502 = vsyncpa [#allocation11], 1 }
 0x27a   :  { %503 = vsyncpa [#allocation14], 1 }
 0x27b   :  { %504 = vsyncpa [#allocation6], 1 }

</bundles_post_ra>
